<compile_context>
chip_gen: v7x
topology: tpu7x:2x2x1
jax: 0.10.0
libtpu: 0.0.40
codegen_flags: <defaults>
</compile_context>

<pallas_src>
import jax
import jax.numpy as jnp
from jax.experimental import pallas as pl
from jax.experimental.pallas import tpu as pltpu

ALPHA = 4


def _slow_pathway_indices(T: int, t_slow: int):
    """Exact-integer equivalent of torch.linspace(0, T-1, t_slow).long()."""
    if t_slow <= 1:
        return [0] * t_slow
    return [(i * (T - 1)) // (t_slow - 1) for i in range(t_slow)]


def pack_pathway(frames: jnp.ndarray):
    """Returns [slow_pathway, fast_pathway] matching PackPathway.forward."""
    C, T, H, W = frames.shape
    t_slow = T // ALPHA
    fast = frames  # identity pathway; no copy needed.

    if t_slow == 0:
        # torch.index_select with an empty index -> empty tensor along dim 1.
        return [jnp.zeros((C, 0, H, W), frames.dtype), fast]

    slow_idx = _slow_pathway_indices(T, t_slow)
    hw = H * W
    x = frames.reshape(C, T, hw)  # free reshape; each frame = C rows of hw elems.

    def gather_kernel(x_ref, o_ref, sems):
        # Direct HBM->HBM gather: one strided DMA per selected slow frame.
        # t_slow is small and static, so the Python loop fully unrolls and the
        # source offsets are immediate constants.
        copies = []
        for t, src_t in enumerate(slow_idx):
            cp = pltpu.make_async_copy(
                x_ref.at[:, pl.ds(src_t, 1), :],
                o_ref.at[:, pl.ds(t, 1), :],
                sems.at[t],
            )
            cp.start()
            copies.append(cp)
        # All copies in flight concurrently; now drain them.
        for cp in copies:
            cp.wait()

    slow = pl.pallas_call(
        gather_kernel,
        out_shape=jax.ShapeDtypeStruct((C, t_slow, hw), frames.dtype),
        in_specs=[pl.BlockSpec(memory_space=pl.ANY)],   # raw HBM ref, no auto-DMA
        out_specs=pl.BlockSpec(memory_space=pl.ANY),    # written only via DMA
        scratch_shapes=[pltpu.SemaphoreType.DMA((t_slow,))],
    )(x)

    return [slow.reshape(C, t_slow, H, W), fast]


if __name__ == "__main__":
    # Small deterministic example: C=3 channels, T=8 frames, 16x16 spatial.
    key = jax.random.PRNGKey(0)
    C, T, H, W = 3, 8, 16, 16
    frames = jax.random.normal(key, (C, T, H, W), dtype=jnp.float32)

    slow, fast = pack_pathway(frames)
    jax.block_until_ready(slow)
    jax.block_until_ready(fast)

    # Reference check (pure JAX) of the index_select semantics.
    t_slow = T // ALPHA
    ref_idx = jnp.asarray(_slow_pathway_indices(T, t_slow), dtype=jnp.int32)
    # Sanity: integer indices agree with linspace truncation for this shape.
    lin_idx = jnp.linspace(0.0, float(T - 1), t_slow).astype(jnp.int32)
    assert jnp.array_equal(ref_idx, lin_idx)

    ref_slow = jnp.take(frames, ref_idx, axis=1)
    assert slow.shape == (C, t_slow, H, W)
    assert fast.shape == frames.shape
    assert jnp.array_equal(slow, ref_slow)
    assert jnp.array_equal(fast, frames)

    print("KERNEL_OK")
</pallas_src>

<mosaic_0001>
module attributes {stable_mosaic.version = 11 : i64} {
  func.func @gather_kernel(%arg0: memref<3x8x256xf32, #tpu.memory_space<any>>, %arg1: memref<3x2x256xf32, #tpu.memory_space<any>>, %arg2: memref<2x!tpu.dma_semaphore, #tpu.memory_space<semaphore_mem>>) attributes {dimension_semantics = [], scalar_prefetch = 0 : i64, scratch_operands = 1 : i64, tpu.core_type = #tpu.core_type<tc>} {
    %c0_i32 = arith.constant 0 : i32
    %c0_i32_0 = arith.constant 0 : i32
    %c0_i32_1 = arith.constant 0 : i32
    %c0_i32_2 = arith.constant 0 : i32
    %0 = tpu.memref_slice %arg0[%c0_i32_0, %c0_i32_1, %c0_i32_2] : memref<3x8x256xf32, #tpu.memory_space<any>> -> memref<3x1x256xf32, #tpu.memory_space<any>>
    %c0_i32_3 = arith.constant 0 : i32
    %c0_i32_4 = arith.constant 0 : i32
    %c0_i32_5 = arith.constant 0 : i32
    %1 = tpu.memref_slice %arg1[%c0_i32_3, %c0_i32_4, %c0_i32_5] : memref<3x2x256xf32, #tpu.memory_space<any>> -> memref<3x1x256xf32, #tpu.memory_space<any>>
    %2 = tpu.memref_slice %arg2[%c0_i32] : memref<2x!tpu.dma_semaphore, #tpu.memory_space<semaphore_mem>> -> memref<1x!tpu.dma_semaphore, #tpu.memory_space<semaphore_mem>>
    %3 = tpu.memref_squeeze %2 : memref<1x!tpu.dma_semaphore, #tpu.memory_space<semaphore_mem>> -> memref<!tpu.dma_semaphore, #tpu.memory_space<semaphore_mem>>
    tpu.enqueue_dma source(%0 : memref<3x1x256xf32, #tpu.memory_space<any>>) target(%1 : memref<3x1x256xf32, #tpu.memory_space<any>>) target_semaphore(%3 : memref<!tpu.dma_semaphore, #tpu.memory_space<semaphore_mem>>)
    %c1_i32 = arith.constant 1 : i32
    %c0_i32_6 = arith.constant 0 : i32
    %c7_i32 = arith.constant 7 : i32
    %c0_i32_7 = arith.constant 0 : i32
    %4 = tpu.memref_slice %arg0[%c0_i32_6, %c7_i32, %c0_i32_7] : memref<3x8x256xf32, #tpu.memory_space<any>> -> memref<3x1x256xf32, #tpu.memory_space<any>>
    %c0_i32_8 = arith.constant 0 : i32
    %c1_i32_9 = arith.constant 1 : i32
    %c0_i32_10 = arith.constant 0 : i32
    %5 = tpu.memref_slice %arg1[%c0_i32_8, %c1_i32_9, %c0_i32_10] : memref<3x2x256xf32, #tpu.memory_space<any>> -> memref<3x1x256xf32, #tpu.memory_space<any>>
    %6 = tpu.memref_slice %arg2[%c1_i32] : memref<2x!tpu.dma_semaphore, #tpu.memory_space<semaphore_mem>> -> memref<1x!tpu.dma_semaphore, #tpu.memory_space<semaphore_mem>>
    %7 = tpu.memref_squeeze %6 : memref<1x!tpu.dma_semaphore, #tpu.memory_space<semaphore_mem>> -> memref<!tpu.dma_semaphore, #tpu.memory_space<semaphore_mem>>
    tpu.enqueue_dma source(%4 : memref<3x1x256xf32, #tpu.memory_space<any>>) target(%5 : memref<3x1x256xf32, #tpu.memory_space<any>>) target_semaphore(%7 : memref<!tpu.dma_semaphore, #tpu.memory_space<semaphore_mem>>)
    %c0_i32_11 = arith.constant 0 : i32
    %c0_i32_12 = arith.constant 0 : i32
    %c0_i32_13 = arith.constant 0 : i32
    %c0_i32_14 = arith.constant 0 : i32
    %8 = tpu.memref_slice %arg0[%c0_i32_12, %c0_i32_13, %c0_i32_14] : memref<3x8x256xf32, #tpu.memory_space<any>> -> memref<3x1x256xf32, #tpu.memory_space<any>>
    %c0_i32_15 = arith.constant 0 : i32
    %c0_i32_16 = arith.constant 0 : i32
    %c0_i32_17 = arith.constant 0 : i32
    %9 = tpu.memref_slice %arg1[%c0_i32_15, %c0_i32_16, %c0_i32_17] : memref<3x2x256xf32, #tpu.memory_space<any>> -> memref<3x1x256xf32, #tpu.memory_space<any>>
    %10 = tpu.memref_slice %arg2[%c0_i32_11] : memref<2x!tpu.dma_semaphore, #tpu.memory_space<semaphore_mem>> -> memref<1x!tpu.dma_semaphore, #tpu.memory_space<semaphore_mem>>
    %11 = tpu.memref_squeeze %10 : memref<1x!tpu.dma_semaphore, #tpu.memory_space<semaphore_mem>> -> memref<!tpu.dma_semaphore, #tpu.memory_space<semaphore_mem>>
    tpu.wait_dma2 semaphore(%11 : memref<!tpu.dma_semaphore, #tpu.memory_space<semaphore_mem>>) src(%8 : memref<3x1x256xf32, #tpu.memory_space<any>>) dst(%9 : memref<3x1x256xf32, #tpu.memory_space<any>>)
    %c1_i32_18 = arith.constant 1 : i32
    %c0_i32_19 = arith.constant 0 : i32
    %c7_i32_20 = arith.constant 7 : i32
    %c0_i32_21 = arith.constant 0 : i32
    %12 = tpu.memref_slice %arg0[%c0_i32_19, %c7_i32_20, %c0_i32_21] : memref<3x8x256xf32, #tpu.memory_space<any>> -> memref<3x1x256xf32, #tpu.memory_space<any>>
    %c0_i32_22 = arith.constant 0 : i32
    %c1_i32_23 = arith.constant 1 : i32
    %c0_i32_24 = arith.constant 0 : i32
    %13 = tpu.memref_slice %arg1[%c0_i32_22, %c1_i32_23, %c0_i32_24] : memref<3x2x256xf32, #tpu.memory_space<any>> -> memref<3x1x256xf32, #tpu.memory_space<any>>
    %14 = tpu.memref_slice %arg2[%c1_i32_18] : memref<2x!tpu.dma_semaphore, #tpu.memory_space<semaphore_mem>> -> memref<1x!tpu.dma_semaphore, #tpu.memory_space<semaphore_mem>>
    %15 = tpu.memref_squeeze %14 : memref<1x!tpu.dma_semaphore, #tpu.memory_space<semaphore_mem>> -> memref<!tpu.dma_semaphore, #tpu.memory_space<semaphore_mem>>
    tpu.wait_dma2 semaphore(%15 : memref<!tpu.dma_semaphore, #tpu.memory_space<semaphore_mem>>) src(%12 : memref<3x1x256xf32, #tpu.memory_space<any>>) dst(%13 : memref<3x1x256xf32, #tpu.memory_space<any>>)
    return
  }
}

</mosaic_0001>

<bundles_post_ra>
// kernel: tpu_custom_call.1
= control target key start
LH: loop header
LB: loop body
LE: loop exit
PB: predicated region body
PF: predicated region fallthrough
CT: control target
= control target key end

     0   :  { %s80_s6 = smov 128   ;;  %s81_s7 = smov 32   ;;  %s110_s0 = inlined_call_operand.hbm [shape: f32[3,8,256], index: 0, kind: input, shape index: {}]   ;;  %s111_s1 = inlined_call_operand.hbm [shape: f32[3,2,256], index: 1, kind: output, shape index: {}]  }
   0x1   :  { %18 = sst [smem:[#allocation4]] %s80_s6  ;;  %s82_s8 = smov 1  }
   0x2   :  { %20 = sst [smem:[#allocation4 + $0x1]] %s81_s7  ;;  %s25_s11 = scalar_lea.hbm %s110_s0, 112 }
   0x3   :  { %22 = sst [smem:[#allocation4 + $0x2]] %s82_s8  ;;  %s83_s12 = smov [#allocation2]  }
   0x4   :  { %s84_s13 = smov [#allocation3]   ;;  %s85_s14 = smov 0  }
   0x5   :  { %24 = dma.general %s110_s0, 96, %s111_s1, %s83_s12, %s84_s13, [#allocation4], %s85_s14, 0  }
   0x6   :  { %40 = sst [smem:[#allocation6]] %s80_s6  ;;  %s26_s21 = scalar_lea.hbm %s111_s1, 16 }
   0x7   :  { %42 = sst [smem:[#allocation6 + $0x1]] %s81_s7  ;;  %s86_s22 = smov [#allocation2 + $0x1]  }
   0x8   :  { %44 = sst [smem:[#allocation6 + $0x2]] %s82_s8  ;;  %s87_s23 = smov [#allocation5]  }
   0x9   :  { %46 = dma.general %s25_s11, 96, %s26_s21, %s86_s22, %s87_s23, [#allocation6], %s85_s14, 0  }
   0xa   :  { %76 = dma.done.wait [#allocation2], 96 }
   0xb   :  { %77 = vsyncadd [#allocation2], 4294967200 }
   0xc   :  { %78 = dma.done.wait [#allocation2 + $0x1], 96 }
   0xd   :  { %79 = vsyncadd [#allocation2 + $0x1], 4294967200 }
   0xe   :  { %53 = vsyncmov [#allocation2] }
  0x11   :  { %s54_s24 = vpop.sfrf %53 }
  0x12   :  { %p66_p0 = scmp.ne.s32.totalorder %s54_s24, 0 }
  0x14   :  { %58 = shalt.err (%p66_p0)  }
  0x15   :  { %60 = vsyncmov [#allocation2 + $0x1] }
  0x18   :  { %s61_s0 = vpop.sfrf %60 }
  0x19   :  { %p67_p1 = scmp.ne.s32.totalorder %s61_s0, 0 }
  0x1b   :  { %65 = shalt.err (%p67_p1)  }

</bundles_post_ra>
